<compile_context>
chip_gen: v5e
topology: v5e:2x2
jax: 0.10.0
libtpu: 0.0.40
codegen_flags: <defaults>
</compile_context>

<pallas_src>
import functools

import jax
import jax.numpy as jnp
from jax.experimental import pallas as pl
from jax.experimental.pallas import tpu as pltpu


def _round_up(n: int, m: int) -> int:
    return ((n + m - 1) // m) * m


def _cheby_kan_kernel(x_ref, coeff_ref, o_ref, t_ref, *, degree: int,
                      mxu_dtype):
    # x_ref:     (tb, I)   one batch tile (original dtype)
    # coeff_ref: (K, tn)   K = (degree+1)*I, one output tile, mxu dtype
    # o_ref:     (tb, tn)
    # t_ref:     (tb, K)   VMEM scratch holding fused Chebyshev basis

    # Build the Chebyshev basis once per batch tile (o == 0), reuse for all
    # output tiles of the same batch tile.
    @pl.when(pl.program_id(1) == 0)
    def _():
        x = jnp.tanh(x_ref[...].astype(jnp.float32))  # recurrence in f32
        ts = [jnp.ones_like(x)]
        if degree > 0:
            ts.append(x)
        for _ in range(2, degree + 1):
            ts.append(2.0 * x * ts[-1] - ts[-2])
        # Fuse the degree axis into the contraction: (tb, (D+1)*I).
        t_ref[...] = jnp.concatenate(ts, axis=-1).astype(mxu_dtype)

    # Single MXU matmul per (batch tile, output tile), f32 accumulation.
    acc = jnp.dot(t_ref[...], coeff_ref[...],
                  preferred_element_type=jnp.float32)
    o_ref[...] = acc.astype(o_ref.dtype)


def cheby_kan_layer(x, cheby_coeffs, *, degree: int,
                    batch_tile: int = 1024, out_tile: int = 512,
                    mxu_dtype=jnp.bfloat16):
    """x: (..., input_dim); cheby_coeffs: (input_dim, output_dim, degree+1)."""
    input_dim, output_dim, dp1 = cheby_coeffs.shape
    assert dp1 == degree + 1
    K = dp1 * input_dim

    # Flatten batch dims.
    x2 = x.reshape(-1, input_dim)
    B = x2.shape[0]
    x_itemsize = jnp.dtype(x2.dtype).itemsize
    coeff_itemsize = jnp.dtype(mxu_dtype).itemsize

    # Batch tiling: multiple of 8 sublanes; pad B up instead of asserting.
    tb = max(8, min(_round_up(batch_tile, 8), _round_up(B, 8)))
    B_pad = _round_up(B, tb)
    if B_pad != B:
        x2 = jnp.pad(x2, ((0, B_pad - B), (0, 0)))

    # Output tiling: lane-dense multiples of 128; pad O up to the tile.
    tn = max(128, min(_round_up(out_tile, 128), _round_up(output_dim, 128)))
    O_pad = _round_up(output_dim, tn)

    # coeffs (I, O, D+1) -> (D+1, I, O) -> (K, O) so row d*I+i matches the
    # column ordering of the in-kernel concat([T_0..T_D]).
    coeffs_2d = jnp.transpose(cheby_coeffs, (2, 0, 1)).reshape(K, output_dim)
    if O_pad != output_dim:
        coeffs_2d = jnp.pad(coeffs_2d, ((0, 0), (0, O_pad - output_dim)))
    coeffs_2d = coeffs_2d.astype(mxu_dtype)

    grid = (B_pad // tb, O_pad // tn)

    # Advisory cost estimate for the XLA scheduler.
    cost = pl.CostEstimate(
        flops=2 * B_pad * K * O_pad + 3 * B_pad * input_dim * max(degree - 1, 0),
        transcendentals=B_pad * input_dim,
        bytes_accessed=(B_pad * input_dim * x_itemsize
                        + K * O_pad * coeff_itemsize
                        + B_pad * O_pad * x_itemsize),
    )

    # Scoped-VMEM budget: double-buffered x/coeff/out tiles + T scratch +
    # f32 recurrence intermediates.
    vmem_need = (2 * tb * input_dim * x_itemsize
                 + 2 * K * tn * coeff_itemsize
                 + 2 * tb * tn * x_itemsize
                 + tb * K * coeff_itemsize
                 + (dp1 + 3) * tb * input_dim * 4)
    vmem_limit = int(min(100 * 1024 * 1024,
                         max(32 * 1024 * 1024, 2 * vmem_need)))

    kernel = functools.partial(_cheby_kan_kernel, degree=degree,
                               mxu_dtype=mxu_dtype)

    out = pl.pallas_call(
        kernel,
        out_shape=jax.ShapeDtypeStruct((B_pad, O_pad), x2.dtype),
        grid_spec=pltpu.PrefetchScalarGridSpec(
            num_scalar_prefetch=0,
            grid=grid,
            in_specs=[
                pl.BlockSpec((tb, input_dim), lambda b, o: (b, 0)),
                pl.BlockSpec((K, tn), lambda b, o: (0, o)),
            ],
            out_specs=pl.BlockSpec((tb, tn), lambda b, o: (b, o)),
            scratch_shapes=[pltpu.VMEM((tb, K), mxu_dtype)],
        ),
        compiler_params=pltpu.CompilerParams(
            # Output-tile axis is "arbitrary": the T-scratch caching relies on
            # sequential iteration over o within each batch tile.
            dimension_semantics=("parallel", "arbitrary"),
            vmem_limit_bytes=vmem_limit),
        cost_estimate=cost,
    )(x2, coeffs_2d)

    return out[:B, :output_dim]


def cheby_kan_reference(x, cheby_coeffs, *, degree: int):
    """Pure-JAX reference mirroring PyTorch slow_ChebyKANLayer.forward."""
    input_dim = cheby_coeffs.shape[0]
    x2 = jnp.tanh(x.reshape(-1, input_dim).astype(jnp.float32))
    chebys = [jnp.ones_like(x2)]
    if degree > 0:
        chebys.append(x2)
    for _ in range(2, degree + 1):
        chebys.append(2.0 * x2 * chebys[-1] - chebys[-2])
    cheby = jnp.stack(chebys, axis=-1)  # (B, I, D+1)
    return jnp.einsum('bid,iod->bo', cheby, cheby_coeffs.astype(jnp.float32))


if __name__ == "__main__":
    key = jax.random.PRNGKey(0)

    # --- Config 1: small, matches the module's typical forward. ------------
    input_dim = 32
    output_dim = 64
    degree = 4
    batch_shape = (2, 8)   # flattens to B = 16 rows of input_dim features

    kx, kc, key = jax.random.split(key, 3)
    x = jax.random.normal(kx, batch_shape + (input_dim,), dtype=jnp.float32)
    # nn.init.normal_(coeffs, mean=0, std=1/(input_dim*(degree+1)))
    std = 1.0 / (input_dim * (degree + 1))
    cheby_coeffs = std * jax.random.normal(
        kc, (input_dim, output_dim, degree + 1), dtype=jnp.float32)

    y_ref = cheby_kan_reference(x, cheby_coeffs, degree=degree)

    # f32 MXU path: tight check against the reference.
    y_f32 = jax.block_until_ready(
        cheby_kan_layer(x, cheby_coeffs, degree=degree, mxu_dtype=jnp.float32))
    assert y_f32.shape == (16, output_dim)
    assert jnp.allclose(y_f32, y_ref, atol=1e-5, rtol=1e-5), (
        float(jnp.max(jnp.abs(y_f32 - y_ref))))

    # Default bf16 MXU path (f32 accumulation): loose tolerance.
    y_bf16 = jax.block_until_ready(
        cheby_kan_layer(x, cheby_coeffs, degree=degree))
    assert y_bf16.shape == (16, output_dim)
    assert jnp.allclose(y_bf16, y_ref, atol=5e-3, rtol=5e-2), (
        float(jnp.max(jnp.abs(y_bf16 - y_ref))))

    # --- Config 2: unaligned B/O with multiple output tiles (exercises the
    # batch padding, output padding, and the T-scratch reuse across o tiles).
    input_dim2, output_dim2, degree2, B2 = 24, 200, 3, 300
    kx2, kc2, key = jax.random.split(key, 3)
    x2 = jax.random.normal(kx2, (B2, input_dim2), dtype=jnp.float32)
    std2 = 1.0 / (input_dim2 * (degree2 + 1))
    coeffs2 = std2 * jax.random.normal(
        kc2, (input_dim2, output_dim2, degree2 + 1), dtype=jnp.float32)

    y2_ref = cheby_kan_reference(x2, coeffs2, degree=degree2)
    y2 = jax.block_until_ready(
        cheby_kan_layer(x2, coeffs2, degree=degree2,
                        out_tile=128, mxu_dtype=jnp.float32))
    assert y2.shape == (B2, output_dim2)
    assert jnp.allclose(y2, y2_ref, atol=1e-5, rtol=1e-5), (
        float(jnp.max(jnp.abs(y2 - y2_ref))))

    print("KERNEL_OK")
</pallas_src>

<mosaic_0001>
module attributes {stable_mosaic.version = 11 : i64} {
  func.func @_cheby_kan_kernel(%arg0: i32, %arg1: i32, %arg2: memref<16x32xf32, #tpu.memory_space<vmem>>, %arg3: memref<160x128xf32, #tpu.memory_space<vmem>>, %arg4: memref<16x128xf32, #tpu.memory_space<vmem>>, %arg5: memref<16x160xf32, #tpu.memory_space<vmem>>) attributes {dimension_semantics = [#tpu.dimension_semantics<parallel>, #tpu.dimension_semantics<arbitrary>], iteration_bounds = array<i64: 1, 1>, scalar_prefetch = 0 : i64, scratch_operands = 1 : i64, tpu.core_type = #tpu.core_type<tc>, window_params = [{transform_indices = @transform_0, window_bounds = array<i64: 16, 32>}, {transform_indices = @transform_1, window_bounds = array<i64: 160, 128>}, {transform_indices = @transform_2, window_bounds = array<i64: 16, 128>}]} {
    %c0_i32 = arith.constant 0 : i32
    %0 = arith.cmpi eq, %arg1, %c0_i32 : i32
    %1 = arith.extui %0 : i1 to i32
    %c0_i32_0 = arith.constant 0 : i32
    %2 = arith.cmpi ne, %1, %c0_i32_0 : i32
    scf.if %2 {
      %c0_6 = arith.constant 0 : index
      %c0_7 = arith.constant 0 : index
      %7 = vector.load %arg2[%c0_6, %c0_7] : memref<16x32xf32, #tpu.memory_space<vmem>>, vector<16x32xf32>
      %8 = math.tanh %7 : vector<16x32xf32>
      %cst_8 = arith.constant 1.000000e+00 : f32
      %9 = vector.broadcast %cst_8 : f32 to vector<16x32xf32>
      %cst_9 = arith.constant 2.000000e+00 : f32
      %10 = vector.broadcast %cst_9 : f32 to vector<16x32xf32>
      %11 = arith.mulf %10, %8 : vector<16x32xf32>
      %12 = arith.mulf %11, %8 : vector<16x32xf32>
      %13 = arith.subf %12, %9 : vector<16x32xf32>
      %cst_10 = arith.constant 2.000000e+00 : f32
      %14 = vector.broadcast %cst_10 : f32 to vector<16x32xf32>
      %15 = arith.mulf %14, %8 : vector<16x32xf32>
      %16 = arith.mulf %15, %13 : vector<16x32xf32>
      %17 = arith.subf %16, %8 : vector<16x32xf32>
      %cst_11 = arith.constant 2.000000e+00 : f32
      %18 = vector.broadcast %cst_11 : f32 to vector<16x32xf32>
      %19 = arith.mulf %18, %8 : vector<16x32xf32>
      %20 = arith.mulf %19, %17 : vector<16x32xf32>
      %21 = arith.subf %20, %13 : vector<16x32xf32>
      %22 = tpu.concatenate %9, %8, %13, %17, %21 in 1 : vector<16x32xf32>, vector<16x32xf32>, vector<16x32xf32>, vector<16x32xf32>, vector<16x32xf32> -> vector<16x160xf32>
      %c0_12 = arith.constant 0 : index
      %c0_13 = arith.constant 0 : index
      %23 = vector.load %arg5[%c0_12, %c0_13] : memref<16x160xf32, #tpu.memory_space<vmem>>, vector<16x160xf32>
      tpu.vector_store %arg5[%c0_12, %c0_13], %22 {strides = array<i32>} : memref<16x160xf32, #tpu.memory_space<vmem>>, vector<16x160xf32>,
    } else {
    }
    %c0 = arith.constant 0 : index
    %c0_1 = arith.constant 0 : index
    %3 = vector.load %arg5[%c0, %c0_1] : memref<16x160xf32, #tpu.memory_space<vmem>>, vector<16x160xf32>
    %c0_2 = arith.constant 0 : index
    %c0_3 = arith.constant 0 : index
    %4 = vector.load %arg3[%c0_2, %c0_3] : memref<160x128xf32, #tpu.memory_space<vmem>>, vector<160x128xf32>
    %cst = arith.constant dense<0.000000e+00> : vector<16x128xf32>
    %5 = tpu.matmul %3, %4, %cst {dimension_numbers = #tpu.dot_dimension_numbers<[1], [0], [0], [1], [0, 0, 1, 1], [], []>} : vector<16x160xf32>, vector<160x128xf32>, vector<16x128xf32> -> vector<16x128xf32>
    %c0_4 = arith.constant 0 : index
    %c0_5 = arith.constant 0 : index
    %6 = vector.load %arg4[%c0_4, %c0_5] : memref<16x128xf32, #tpu.memory_space<vmem>>, vector<16x128xf32>
    tpu.vector_store %arg4[%c0_4, %c0_5], %5 {strides = array<i32>} : memref<16x128xf32, #tpu.memory_space<vmem>>, vector<16x128xf32>,
    return
  }
  func.func @transform_0(%arg0: i32, %arg1: i32) -> (i32, i32) {
    %c0_i32 = arith.constant 0 : i32
    %c0_i32_0 = arith.constant 0 : i32
    return %arg0, %c0_i32 : i32, i32
  }
  func.func @transform_1(%arg0: i32, %arg1: i32) -> (i32, i32) {
    %c0_i32 = arith.constant 0 : i32
    %c0_i32_0 = arith.constant 0 : i32
    return %c0_i32, %arg1 : i32, i32
  }
  func.func @transform_2(%arg0: i32, %arg1: i32) -> (i32, i32) {
    %c0_i32 = arith.constant 0 : i32
    return %arg0, %arg1 : i32, i32
  }
}

</mosaic_0001>

<bundles_post_ra>
// kernel: tpu_custom_call.1
= control target key start
LH: loop header
LB: loop body
LE: loop exit
PB: predicated region body
PF: predicated region fallthrough
CT: control target
= control target key end

     0   :  { %7 = vsyncpa [#allocation4], 0  ;;  %s359_s0 = inlined_call_operand.hbm [shape: f32[16,32], index: 0, kind: input, shape index: {}]   ;;  %s360_s1 = inlined_call_operand.hbm [shape: f32[160,128], index: 1, kind: input, shape index: {}]   ;;  %s361_s2 = inlined_call_operand.hbm [shape: f32[16,128], index: 2, kind: output, shape index: {}]  }
   0x1   :  { %8 = vsyncpa [#allocation7], 0 }
   0x2   :  { %9 = vsyncpa [#allocation5], 0  ;;  %s14_s11 = sshll.u32 %s359_s0, 4  ;;  %s312_s12 = smov [#allocation3]   ;;  %s15_s11 = int_to_ptr.hbm [resolvable:$true] %s14_s11 }
   0x3   :  { %s16_s13 = sshll.u32 %s312_s12, 4  ;;  %s27_s16 = sshll.u32 %s360_s1, 4  ;;  %s17_s13 = int_to_ptr.vmem [resolvable:$true] %s16_s13  ;;  %s28_s16 = int_to_ptr.hbm [resolvable:$true] %s27_s16 }
   0x4   :  { %s313_s17 = smov 128   ;;  %s314_s18 = smov 8  }
   0x5   :  { %22 = dma.hbm_to_vmem [thread:$0]  %s15_s11, 256, %s17_s13, [#allocation4], %s313_s17, %s313_s17, %s314_s18  }
   0x6   :  { %s315_s19 = smov [#allocation6]  }
   0x7   :  { %s29_s20 = sshll.u32 %s315_s19, 4  ;;  %s30_s20 = int_to_ptr.vmem [resolvable:$true] %s29_s20 }
   0x8   :  { %35 = dma.hbm_to_vmem [thread:$0]  %s28_s16, 2560, %s30_s20, [#allocation7], %s313_s17, %s313_s17, %s314_s18  }
   0x9   :  { %306 = dma.done.wait [#allocation4], 256  }
   0xa   :  { %307 = vsyncadd [#allocation4], 4294967040 }
   0xb   :  { %308 = dma.done.wait [#allocation7], 2560  }
   0xc   :  { %309 = vsyncadd [#allocation7], 4294964736  ;;  %v49_v0 = vld [vmem:[#allocation3 + $0x8] sm:$0xff]  ;;  %v48_v1 = vld [vmem:[#allocation3] sm:$0xff]  ;;  %s316_s0 = smov 32   ;;  %s317_s1 = smov 64  }
   0xd   :  { %v122_v2 = vld [vmem:[#allocation6 + $0x78] sm:$0xff]  ;;  %230 = vtanh.f32 %v49_v0  ;;  %v121_v3 = vld [vmem:[#allocation6 + $0x70] sm:$0xff]  ;;  %v120_v4 = vld [vmem:[#allocation6 + $0x68] sm:$0xff]  ;;  %s318_s21 = smov 96   ;;  %vm90_vm0 = vcmask 261120   ;;  %vm93_vm1 = vcmask 523264  }
   0xe   :  { %206 = vmatpush.msra.mxu2 %v122_v2  ;;  %134 = vmatpush.msra.mxu0 %v122_v2  ;;  %232 = vtanh.f32 %v48_v1  ;;  %v119_v5 = vld [vmem:[#allocation6 + $0x60] sm:$0xff]  ;;  %v118_v6 = vld [vmem:[#allocation6 + $0x58] sm:$0xff]  ;;  %v117_v10 = vld [vmem:[#allocation6 + $0x50] sm:$0xff]  ;;  %vm96_vm2 = vcmask 785408   ;;  %s319_s22 = smov [#allocation8]   ;;  %s188_s26 = sshll.u32 %s361_s2, 4  ;;  %s189_s26 = int_to_ptr.hbm [resolvable:$true] %s188_s26 }
   0xf   :  { %v116_v24 = vld [vmem:[#allocation6 + $0x48] sm:$0xff]  ;;  %v115_v25 = vld [vmem:[#allocation6 + $0x40] sm:$0xff]  ;;  %v114_v26 = vld [vmem:[#allocation6 + $0x38] sm:$0xff]  ;;  %s186_s23 = sshll.u32 %s319_s22, 4  ;;  %s187_s23 = int_to_ptr.vmem [resolvable:$true] %s186_s23 }
  0x10   :  { %207 = vmatpush.msra.mxu2 %v121_v3  ;;  %135 = vmatpush.msra.mxu0 %v121_v3  ;;  %v113_v27 = vld [vmem:[#allocation6 + $0x30] sm:$0xff]  ;;  %v112_v28 = vld [vmem:[#allocation6 + $0x28] sm:$0xff]  ;;  %v111_v29 = vld [vmem:[#allocation6 + $0x20] sm:$0xff] }
  0x11   :  { %v126_v30 = vld [vmem:[#allocation6 + $0x98] sm:$0xff]  ;;  %v125_v32 = vld [vmem:[#allocation6 + $0x90] sm:$0xff]  ;;  %v124_v34 = vld [vmem:[#allocation6 + $0x88] sm:$0xff] }
  0x12   :  { %208 = vmatpush.msra.mxu2 %v120_v4  ;;  %136 = vmatpush.msra.mxu0 %v120_v4  ;;  %v110_v31 = vld [vmem:[#allocation6 + $0x18] sm:$0xff]  ;;  %v109_v33 = vld [vmem:[#allocation6 + $0x10] sm:$0xff]  ;;  %v108_v35 = vld [vmem:[#allocation6 + $0x8] sm:$0xff] }
  0x13   :  { %v231_v7 = vpop.eup %230  ;;  %169 = vmatpush.msra.mxu1 %v126_v30  ;;  %v123_v36 = vld [vmem:[#allocation6 + $0x80] sm:$0xff] }
  0x14   :  { %209 = vmatpush.msra.mxu2 %v119_v5  ;;  %137 = vmatpush.msra.mxu0 %v119_v5  ;;  %v233_v8 = vpop.eup %232  ;;  %v53_v9 = vmul.f32 2.0, %v231_v7  ;;  %v107_v38 = vld [vmem:[#allocation6] sm:$0xff] }
  0x15   :  { %70 = vrot.lane.b32.xlu0 %v231_v7, %s316_s0  ;;  %v52_v11 = vmul.f32 2.0, %v233_v8  ;;  %170 = vmatpush.msra.mxu1 %v125_v32 }
  0x16   :  { %210 = vmatpush.msra.mxu2 %v118_v6  ;;  %138 = vmatpush.msra.mxu0 %v118_v6  ;;  %v55_v12 = vmul.f32 %v231_v7, %v53_v9 }
  0x17   :  { %v54_v13 = vmul.f32 %v233_v8, %v52_v11  ;;  %171 = vmatpush.msra.mxu1 %v124_v34 }
  0x18   :  { %211 = vmatpush.msra.mxu2 %v117_v10  ;;  %139 = vmatpush.msra.mxu0 %v117_v10  ;;  %v203_v14 = vadd.f32 -1.0, %v55_v12 }
  0x19   :  { %v202_v15 = vadd.f32 -1.0, %v54_v13  ;;  %172 = vmatpush.msra.mxu1 %v123_v36 }
  0x1a   :  { %v59_v16 = vmul.f32 %v203_v14, %v53_v9  ;;  %212 = vmatpush.msra.mxu2 %v116_v24  ;;  %140 = vmatpush.msra.mxu0 %v116_v24 }
  0x1b   :  { %76 = vrot.lane.b32.xlu2 %v202_v15, %s317_s1  ;;  %v58_v17 = vmul.f32 %v202_v15, %v52_v11 }
  0x1c   :  { %v61_v18 = vsub.f32 %v59_v16, %v231_v7  ;;  %213 = vmatpush.msra.mxu2 %v115_v25  ;;  %141 = vmatpush.msra.mxu0 %v115_v25 }
  0x1d   :  { %78 = vrot.lane.b32.xlu0 %v203_v14, %s317_s1  ;;  %v60_v19 = vsub.f32 %v58_v17, %v233_v8 }
  0x1e   :  { %86 = vrot.lane.b32.xlu1 %v61_v18, %s318_s21  ;;  %v63_v20 = vmul.f32 %v61_v18, %v53_v9  ;;  %214 = vmatpush.msra.mxu2 %v114_v26 }
  0x1f   :  { %v62_v21 = vmul.f32 %v60_v19, %v52_v11  ;;  %142 = vmatpush.msra.mxu0 %v114_v26 }
  0x20   :  { %v65_v22 = vsub.f32 %v63_v20, %v203_v14  ;;  %215 = vmatpush.msra.mxu2 %v113_v27 }
  0x21   :  { %v64_v23 = vsub.f32 %v62_v21, %v202_v15  ;;  %143 = vmatpush.msra.mxu0 %v113_v27 }
  0x22   :  { %102 = vst.msk [vmem:[#allocation2 + $0x18] sm:$0xff] %vm90_vm0, %v65_v22  ;;  %216 = vmatpush.msra.mxu2 %v112_v28 }
  0x23   :  { %84 = vrot.lane.b32.xlu2 %v60_v19, %s318_s21  ;;  %100 = vst.msk [vmem:[#allocation2 + $0x8] sm:$0xff] %vm90_vm0, %v64_v23  ;;  %144 = vmatpush.msra.mxu0 %v112_v28 }
  0x24   :  { %217 = vmatpush.msra.mxu2 %v111_v29 }
  0x25   :  { %145 = vmatpush.msra.mxu0 %v111_v29 }
  0x26   :  { %68 = vrot.lane.b32.xlu1 %v233_v8, %s316_s0  ;;  %218 = vmatpush.msra.mxu2 %v110_v31 }
  0x27   :  { %146 = vmatpush.msra.mxu0 %v110_v31 }
  0x28   :  { %219 = vmatpush.msra.mxu2 %v109_v33 }
  0x29   :  { %147 = vmatpush.msra.mxu0 %v109_v33  ;;  %v106_v39 = vld [vmem:[#allocation2 + $0x18] sm:$0xff] }
  0x2a   :  { %220 = vmatpush.msra.mxu2 %v108_v35  ;;  %v104_v37 = vld [vmem:[#allocation2 + $0x8] sm:$0xff] }
  0x2b   :  { %204 = vmatmul.msk.f32.vlgmr.msra.gmra.mxu1 %vm90_vm0, %v104_v37  ;;  %148 = vmatpush.msra.mxu0 %v108_v35 }
  0x2c   :  { %221 = vmatpush.msra.mxu2 %v107_v38 }
  0x2d   :  { %149 = vmatpush.msra.mxu0 %v107_v38 }
  0x33   :  { %205 = vmatmul.msk.f32.gmra.mxu1 %vm90_vm0, %v106_v39 }
  0x75   :  { %v77_v43 = vpop.permute.xlu2 %76 }
  0x7d   :  { %v85_v48 = vpop.permute.xlu2 %84 }
  0x87   :  { %v71_v40 = vpop.permute.xlu0 %70 }
  0x88   :  { %v92_v41 = vsel %vm90_vm0, 1.0, %v71_v40 }
  0x8f   :  { %v79_v42 = vpop.permute.xlu0 %78 }
  0x90   :  { %v95_v44 = vsel %vm93_vm1, %v92_v41, %v79_v42  ;;  %v87_v45 = vpop.permute.xlu1 %86 }
  0x91   :  { %v98_v46 = vsel %vm96_vm2, %v95_v44, %v87_v45 }
  0x92   :  { %153 = vmatmul.f32.vlgmr.msra.gmra.mxu2 %v98_v46 }
  0x98   :  { %v69_v47 = vpop.permute.xlu1 %68 }
  0x99   :  { %v91_v49 = vsel %vm90_vm0, 1.0, %v69_v47 }
  0x9a   :  { %v94_v50 = vsel %vm93_vm1, %v91_v49, %v77_v43 }
  0x9b   :  { %v97_v51 = vsel %vm96_vm2, %v94_v50, %v85_v48 }
  0x9c   :  { %150 = vmatmul.f32.vlgmr.msra.gmra.mxu0 %v97_v51 }
  0xa8   :  { %v174_v52 = vpop.f32.mrf.mxu1 }
  0xb0   :  { %v177_v53 = vpop.f32.mrf.mxu1 }
 0x115   :  { %v154_v54 = vpop.f32.mrf.mxu2 }
 0x116   :  { %v178_v55 = vadd.f32 %v177_v53, %v154_v54 }
 0x118   :  { %181 = vst [vmem:[#allocation8 + $0x8] sm:$0xff] %v178_v55 }
 0x119   :  { %v151_v56 = vpop.f32.mrf.mxu0 }
 0x11a   :  { %v175_v57 = vadd.f32 %v174_v52, %v151_v56 }
 0x11c   :  { %180 = vst [vmem:[#allocation8] sm:$0xff] %v175_v57 }
 0x11d   :  { %194 = dma.vmem_to_hbm [thread:$0]  %s187_s23, 256, %s189_s26, [#allocation5], %s313_s17, %s313_s17, %s314_s18  }
 0x11e   :  { %310 = dma.done.wait [#allocation5], 256  }
 0x11f   :  { %311 = vsyncadd [#allocation5], 4294967040 }
 0x120   :  { %199 = vsyncpa [#allocation4], 1 }
 0x121   :  { %200 = vsyncpa [#allocation7], 1 }
 0x122   :  { %201 = vsyncpa [#allocation5], 1 }

</bundles_post_ra>
